<compile_context>
chip_gen: v7x
topology: tpu7x:2x2x1
jax: 0.10.0
libtpu: 0.0.40
codegen_flags: <defaults>
</compile_context>

<pallas_src>
import functools

import jax
import jax.numpy as jnp
from jax.experimental import pallas as pl
from jax.experimental.pallas import tpu as pltpu


def _cam_kernel(x_ref, w1t_ref, w2t_ref, o_ref, sum_ref, max_ref, *,
                inv_hw, hw_valid, needs_mask):
    # x_ref  : (Bt, C, HWt)   batch tile; channels on sublanes, spatial on lanes (lane-dense)
    # w1t_ref: (C, Cr)        transposed weight of Conv2d(C -> Cr, 1x1, bias=False)
    # w2t_ref: (Cr, C)        transposed weight of Conv2d(Cr -> C, 1x1, bias=False)
    # o_ref  : (Bt, 1, C)     sigmoid(fc(avg) + fc(max)) for this batch tile
    # sum_ref: (Bt, C, 128)   f32 lane-partial running sum
    # max_ref: (Bt, C, 128)   input-dtype lane-partial running max
    hw_step = pl.program_id(1)
    hw_tile = x_ref.shape[-1]
    n_slices = hw_tile // 128

    @pl.when(hw_step == 0)
    def _init():
        sum_ref[...] = jnp.zeros_like(sum_ref)
        max_ref[...] = jnp.full(max_ref.shape, -jnp.inf, dtype=max_ref.dtype)

    # Steady state: pure elementwise (VPU) accumulation over static 128-lane slices.
    # No XLU lane-reduce and no sublane->lane relayout per grid step.
    s = sum_ref[...]
    m = max_ref[...]
    neg_fill = jnp.array(-jnp.inf, dtype=m.dtype)
    if needs_mask:
        lane_iota = jax.lax.broadcasted_iota(jnp.int32, s.shape, 2)   # hoisted out of loop
    for k in range(n_slices):
        xk = x_ref[:, :, k * 128:(k + 1) * 128]
        s = s + xk.astype(jnp.float32)
        xk_m = xk.astype(m.dtype)
        if needs_mask:
            idx = lane_iota + (hw_step * hw_tile + k * 128)
            xk_m = jnp.where(idx < hw_valid, xk_m, neg_fill)
        m = jnp.maximum(m, xk_m)
    sum_ref[...] = s
    max_ref[...] = m

    @pl.when(hw_step == pl.num_programs(1) - 1)
    def _finalize():
        # Single cross-lane reduce (+ relayout) per batch tile, then the tiny shared MLP.
        avg = jnp.sum(sum_ref[...], axis=-1) * inv_hw                    # (Bt, C) f32
        mx = jnp.max(max_ref[...], axis=-1).astype(jnp.float32)          # (Bt, C) f32
        w1t = w1t_ref[...].astype(jnp.float32)                           # (C, Cr)
        w2t = w2t_ref[...].astype(jnp.float32)                           # (Cr, C)

        h_avg = jnp.maximum(
            jnp.dot(avg, w1t, preferred_element_type=jnp.float32), 0.0)  # (Bt, Cr)
        h_max = jnp.maximum(
            jnp.dot(mx, w1t, preferred_element_type=jnp.float32), 0.0)   # (Bt, Cr)
        # fc(avg) + fc(max): second 1x1 conv is linear (no bias) -> sum after ReLU.
        y = jnp.dot(h_avg + h_max, w2t, preferred_element_type=jnp.float32)  # (Bt, C)

        o_ref[...] = jnp.expand_dims(jax.nn.sigmoid(y), 1).astype(o_ref.dtype)


def _pick_tiles(B, C, HWp, itemsize, budget_bytes, min_lanes=512):
    """hw_tile: multiple of 128 dividing HWp, grown toward the budget, floored at
    min(512, HWp) lanes for DMA efficiency.  b_tile: grown only after hw_tile is maxed,
    capped so B // b_tile >= 2 (keeps both v7x TensorCores busy)."""
    cands = [t for t in range(128, HWp + 1, 128) if HWp % t == 0]
    fitting = [t for t in cands if C * t * itemsize <= budget_bytes]
    hw_tile = max(fitting) if fitting else cands[0]
    floor = min(min_lanes, HWp)
    if hw_tile < floor:
        bigger = [t for t in cands if t >= floor]
        if bigger:
            hw_tile = min(bigger)
    b_tile = 1
    for b in range(1, min(B, 8) + 1):
        if B % b != 0:
            continue
        if b * C * hw_tile * itemsize > budget_bytes:
            continue
        if B // b >= 2 or B == 1:
            b_tile = b
    return b_tile, hw_tile


def channel_attention_module(x, w1, w2, *, block_budget_bytes=4 * 1024 * 1024,
                             hw_tile=None, b_tile=None):
    """x: (B, C, H, W) float (NCHW, like PyTorch).
    w1: (Cr, C, 1, 1) first 1x1-conv weight. w2: (C, Cr, 1, 1) second 1x1-conv weight.
    Returns (B, C, 1, 1)."""
    B, C, H, W = x.shape
    Cr = w1.shape[0]
    HW = H * W
    itemsize = x.dtype.itemsize

    # Glue (free views / tiny ops — no full-tensor transpose of x).
    x_flat = x.reshape(B, C, HW)                     # (B, C, HW) — free NCHW view
    HWp = ((HW + 127) // 128) * 128                  # pad spatial to a lane multiple
    needs_mask = HWp != HW
    if needs_mask:
        # Zero padding: exact for the sum path; max path masks padded lanes in-kernel.
        x_flat = jnp.pad(x_flat, ((0, 0), (0, 0), (0, HWp - HW)))
    w1t = jnp.transpose(w1.reshape(Cr, C))           # (C, Cr)
    w2t = jnp.transpose(w2.reshape(C, Cr))           # (Cr, C)

    auto_b, auto_hw = _pick_tiles(B, C, HWp, itemsize, block_budget_bytes)
    if hw_tile is None:
        hw_tile = auto_hw
    if b_tile is None:
        b_tile = auto_b
    assert hw_tile % 128 == 0 and HWp % hw_tile == 0, "hw_tile must be a 128-multiple divisor"
    assert B % b_tile == 0, "b_tile must divide B"
    grid = (B // b_tile, HWp // hw_tile)

    kernel = functools.partial(_cam_kernel, inv_hw=1.0 / float(HW),
                               hw_valid=HW, needs_mask=needs_mask)

    # Explicit VMEM budget: 2x double-buffered x block + weights + scratch + output + headroom.
    x_block_bytes = b_tile * C * hw_tile * itemsize
    w_bytes = w1t.size * w1t.dtype.itemsize + w2t.size * w2t.dtype.itemsize
    out_block_bytes = b_tile * max(C, 128) * itemsize
    scratch_bytes = b_tile * C * 128 * (4 + itemsize)
    vmem_needed = 2 * x_block_bytes + 2 * w_bytes + 2 * out_block_bytes + scratch_bytes
    vmem_limit = int(min(max(vmem_needed + (4 << 20), 16 << 20), 64 << 20))

    bytes_accessed = int(
        x_flat.size * x_flat.dtype.itemsize
        + w1t.size * w1t.dtype.itemsize
        + w2t.size * w2t.dtype.itemsize
        + B * C * itemsize)
    cost = pl.CostEstimate(
        flops=int(2 * B * C * HW + 6 * B * C * Cr),   # pooling reductions + tiny shared MLP
        transcendentals=int(B * C),                   # sigmoid
        bytes_accessed=bytes_accessed,
    )

    out = pl.pallas_call(
        kernel,
        out_shape=jax.ShapeDtypeStruct((B, 1, C), x.dtype),
        grid_spec=pltpu.PrefetchScalarGridSpec(
            num_scalar_prefetch=0,
            grid=grid,
            in_specs=[
                pl.BlockSpec((b_tile, C, hw_tile), lambda b, h: (b, 0, h)),
                pl.BlockSpec((C, Cr), lambda b, h: (0, 0)),
                pl.BlockSpec((Cr, C), lambda b, h: (0, 0)),
            ],
            out_specs=pl.BlockSpec((b_tile, 1, C), lambda b, h: (b, 0, 0)),
            scratch_shapes=[
                pltpu.VMEM((b_tile, C, 128), jnp.float32),   # lane-partial running sum
                pltpu.VMEM((b_tile, C, 128), x.dtype),       # lane-partial running max
            ],
        ),
        compiler_params=pltpu.CompilerParams(
            dimension_semantics=("parallel", "arbitrary"),
            vmem_limit_bytes=vmem_limit,
        ),
        cost_estimate=cost,
    )(x_flat, w1t, w2t)

    return out.reshape(B, C, 1, 1)


def _reference(x, w1, w2):
    # Pure-JAX reference mirroring the PyTorch forward.
    B, C, H, W = x.shape
    Cr = w1.shape[0]
    w1m = w1.reshape(Cr, C)
    w2m = w2.reshape(C, Cr)

    def fc(p):  # p: (B, C)
        h = jnp.maximum(p @ w1m.T, 0.0)
        return h @ w2m.T

    avg = jnp.mean(x, axis=(2, 3))
    mx = jnp.max(x, axis=(2, 3))
    return jax.nn.sigmoid(fc(avg) + fc(mx)).reshape(B, C, 1, 1)


if __name__ == "__main__":
    key = jax.random.PRNGKey(0)
    B, C, H, W = 2, 16, 16, 16
    reduction = 4
    Cr = C // reduction

    kx, k1, k2, k3 = jax.random.split(key, 4)
    x = jax.random.normal(kx, (B, C, H, W), dtype=jnp.float32)

    # Deterministic synthetic weights (kaiming-uniform-like scale, no checkpoint load).
    bound1 = 1.0 / (C ** 0.5)
    bound2 = 1.0 / (Cr ** 0.5)
    w1 = jax.random.uniform(k1, (Cr, C, 1, 1), jnp.float32, -bound1, bound1)
    w2 = jax.random.uniform(k2, (C, Cr, 1, 1), jnp.float32, -bound2, bound2)

    ref = _reference(x, w1, w2)

    # Default: auto-picked tiles (full spatial extent per batch element here).
    out1 = jax.block_until_ready(channel_attention_module(x, w1, w2))
    # Force hw_tile=128 -> exercises the multi-HW-step lane-partial accumulation path.
    out2 = jax.block_until_ready(channel_attention_module(x, w1, w2, hw_tile=128))

    # Non-128-divisible spatial extent (HW=100 -> padded to 128) with all-negative values,
    # so the masked-max path is actually verified (unmasked zero padding would win the max).
    x_odd = jax.random.normal(k3, (B, C, 10, 10), dtype=jnp.float32) - 5.0
    ref_odd = _reference(x_odd, w1, w2)
    out3 = jax.block_until_ready(channel_attention_module(x_odd, w1, w2))

    assert out1.shape == (B, C, 1, 1)
    assert jnp.allclose(out1, ref, atol=1e-5, rtol=1e-5), "mismatch (single hw step)"
    assert jnp.allclose(out2, ref, atol=1e-5, rtol=1e-5), "mismatch (multi hw step)"
    assert jnp.allclose(out3, ref_odd, atol=1e-5, rtol=1e-5), "mismatch (padded/masked path)"

    print("KERNEL_OK")
</pallas_src>

<mosaic_0001>
module attributes {stable_mosaic.version = 11 : i64} {
  func.func @_cam_kernel(%arg0: i32, %arg1: i32, %arg2: memref<1x16x256xf32, #tpu.memory_space<vmem>>, %arg3: memref<16x4xf32, #tpu.memory_space<vmem>>, %arg4: memref<4x16xf32, #tpu.memory_space<vmem>>, %arg5: memref<1x1x16xf32, #tpu.memory_space<vmem>>, %arg6: memref<1x16x128xf32, #tpu.memory_space<vmem>>, %arg7: memref<1x16x128xf32, #tpu.memory_space<vmem>>) attributes {dimension_semantics = [#tpu.dimension_semantics<parallel>, #tpu.dimension_semantics<arbitrary>], iteration_bounds = array<i64: 2, 1>, scalar_prefetch = 0 : i64, scratch_operands = 2 : i64, tpu.core_type = #tpu.core_type<tc>, window_params = [{transform_indices = @transform_0, window_bounds = array<i64: 1, 16, 256>}, {pipeline_mode = #tpu.pipeline_mode<synchronous>, transform_indices = @transform_1, window_bounds = array<i64: 16, 4>}, {pipeline_mode = #tpu.pipeline_mode<synchronous>, transform_indices = @transform_2, window_bounds = array<i64: 4, 16>}, {transform_indices = @transform_3, window_bounds = array<i64: 1, 1, 16>}]} {
    %c0_i32 = arith.constant 0 : i32
    %0 = arith.cmpi eq, %arg1, %c0_i32 : i32
    %1 = arith.extui %0 : i1 to i32
    %c0_i32_0 = arith.constant 0 : i32
    %2 = arith.cmpi ne, %1, %c0_i32_0 : i32
    scf.if %2 {
      %cst = arith.constant 0.000000e+00 : f32
      %16 = vector.broadcast %cst : f32 to vector<1x16x128xf32>
      %c0_19 = arith.constant 0 : index
      %c0_20 = arith.constant 0 : index
      %c0_21 = arith.constant 0 : index
      %17 = vector.load %arg6[%c0_19, %c0_20, %c0_21] : memref<1x16x128xf32, #tpu.memory_space<vmem>>, vector<1x16x128xf32>
      tpu.vector_store %arg6[%c0_19, %c0_20, %c0_21], %16 {strides = array<i32>} : memref<1x16x128xf32, #tpu.memory_space<vmem>>, vector<1x16x128xf32>,
      %cst_22 = arith.constant 0xFF800000 : f32
      %18 = vector.broadcast %cst_22 : f32 to vector<1x16x128xf32>
      %c0_23 = arith.constant 0 : index
      %c0_24 = arith.constant 0 : index
      %c0_25 = arith.constant 0 : index
      %19 = vector.load %arg7[%c0_23, %c0_24, %c0_25] : memref<1x16x128xf32, #tpu.memory_space<vmem>>, vector<1x16x128xf32>
      tpu.vector_store %arg7[%c0_23, %c0_24, %c0_25], %18 {strides = array<i32>} : memref<1x16x128xf32, #tpu.memory_space<vmem>>, vector<1x16x128xf32>,
    } else {
    }
    %c0 = arith.constant 0 : index
    %c0_1 = arith.constant 0 : index
    %c0_2 = arith.constant 0 : index
    %3 = vector.load %arg6[%c0, %c0_1, %c0_2] : memref<1x16x128xf32, #tpu.memory_space<vmem>>, vector<1x16x128xf32>
    %c0_3 = arith.constant 0 : index
    %c0_4 = arith.constant 0 : index
    %c0_5 = arith.constant 0 : index
    %4 = vector.load %arg7[%c0_3, %c0_4, %c0_5] : memref<1x16x128xf32, #tpu.memory_space<vmem>>, vector<1x16x128xf32>
    %c0_6 = arith.constant 0 : index
    %c0_7 = arith.constant 0 : index
    %c0_8 = arith.constant 0 : index
    %5 = vector.load %arg2[%c0_6, %c0_7, %c0_8] : memref<1x16x256xf32, #tpu.memory_space<vmem>>, vector<1x16x128xf32>
    %6 = arith.addf %3, %5 : vector<1x16x128xf32>
    %7 = arith.maximumf %4, %5 : vector<1x16x128xf32>
    %c0_9 = arith.constant 0 : index
    %c0_10 = arith.constant 0 : index
    %c128 = arith.constant 128 : index
    %8 = vector.load %arg2[%c0_9, %c0_10, %c128] : memref<1x16x256xf32, #tpu.memory_space<vmem>>, vector<1x16x128xf32>
    %9 = arith.addf %6, %8 : vector<1x16x128xf32>
    %10 = arith.maximumf %7, %8 : vector<1x16x128xf32>
    %c0_11 = arith.constant 0 : index
    %c0_12 = arith.constant 0 : index
    %c0_13 = arith.constant 0 : index
    %11 = vector.load %arg6[%c0_11, %c0_12, %c0_13] : memref<1x16x128xf32, #tpu.memory_space<vmem>>, vector<1x16x128xf32>
    tpu.vector_store %arg6[%c0_11, %c0_12, %c0_13], %9 {strides = array<i32>} : memref<1x16x128xf32, #tpu.memory_space<vmem>>, vector<1x16x128xf32>,
    %c0_14 = arith.constant 0 : index
    %c0_15 = arith.constant 0 : index
    %c0_16 = arith.constant 0 : index
    %12 = vector.load %arg7[%c0_14, %c0_15, %c0_16] : memref<1x16x128xf32, #tpu.memory_space<vmem>>, vector<1x16x128xf32>
    tpu.vector_store %arg7[%c0_14, %c0_15, %c0_16], %10 {strides = array<i32>} : memref<1x16x128xf32, #tpu.memory_space<vmem>>, vector<1x16x128xf32>,
    %c0_i32_17 = arith.constant 0 : i32
    %13 = arith.cmpi eq, %arg1, %c0_i32_17 : i32
    %14 = arith.extui %13 : i1 to i32
    %c0_i32_18 = arith.constant 0 : i32
    %15 = arith.cmpi ne, %14, %c0_i32_18 : i32
    scf.if %15 {
      %c0_19 = arith.constant 0 : index
      %c0_20 = arith.constant 0 : index
      %c0_21 = arith.constant 0 : index
      %16 = vector.load %arg6[%c0_19, %c0_20, %c0_21] : memref<1x16x128xf32, #tpu.memory_space<vmem>>, vector<1x16x128xf32>
      %cst = arith.constant dense<0.000000e+00> : vector<1x16xf32>
      %17 = vector.multi_reduction <add>, %16, %cst [2] : vector<1x16x128xf32> to vector<1x16xf32>
      %cst_22 = arith.constant 3.906250e-03 : f32
      %18 = vector.broadcast %cst_22 : f32 to vector<1x16xf32>
      %19 = arith.mulf %17, %18 : vector<1x16xf32>
      %c0_23 = arith.constant 0 : index
      %c0_24 = arith.constant 0 : index
      %c0_25 = arith.constant 0 : index
      %20 = vector.load %arg7[%c0_23, %c0_24, %c0_25] : memref<1x16x128xf32, #tpu.memory_space<vmem>>, vector<1x16x128xf32>
      %cst_26 = arith.constant dense<0xFF800000> : vector<1x16xf32>
      %21 = vector.multi_reduction <maximumf>, %20, %cst_26 [2] : vector<1x16x128xf32> to vector<1x16xf32>
      %c0_27 = arith.constant 0 : index
      %c0_28 = arith.constant 0 : index
      %22 = vector.load %arg3[%c0_27, %c0_28] : memref<16x4xf32, #tpu.memory_space<vmem>>, vector<16x4xf32>
      %c0_29 = arith.constant 0 : index
      %c0_30 = arith.constant 0 : index
      %23 = vector.load %arg4[%c0_29, %c0_30] : memref<4x16xf32, #tpu.memory_space<vmem>>, vector<4x16xf32>
      %cst_31 = arith.constant dense<0.000000e+00> : vector<1x4xf32>
      %24 = tpu.matmul %19, %22, %cst_31 {dimension_numbers = #tpu.dot_dimension_numbers<[1], [0], [0], [1], [0, 0, 1, 1], [], []>} : vector<1x16xf32>, vector<16x4xf32>, vector<1x4xf32> -> vector<1x4xf32>
      %cst_32 = arith.constant 0.000000e+00 : f32
      %25 = vector.broadcast %cst_32 : f32 to vector<1x4xf32>
      %26 = arith.maximumf %24, %25 : vector<1x4xf32>
      %cst_33 = arith.constant dense<0.000000e+00> : vector<1x4xf32>
      %27 = tpu.matmul %21, %22, %cst_33 {dimension_numbers = #tpu.dot_dimension_numbers<[1], [0], [0], [1], [0, 0, 1, 1], [], []>} : vector<1x16xf32>, vector<16x4xf32>, vector<1x4xf32> -> vector<1x4xf32>
      %cst_34 = arith.constant 0.000000e+00 : f32
      %28 = vector.broadcast %cst_34 : f32 to vector<1x4xf32>
      %29 = arith.maximumf %27, %28 : vector<1x4xf32>
      %30 = arith.addf %26, %29 : vector<1x4xf32>
      %cst_35 = arith.constant dense<0.000000e+00> : vector<1x16xf32>
      %31 = tpu.matmul %30, %23, %cst_35 {dimension_numbers = #tpu.dot_dimension_numbers<[1], [0], [0], [1], [0, 0, 1, 1], [], []>} : vector<1x4xf32>, vector<4x16xf32>, vector<1x16xf32> -> vector<1x16xf32>
      %32 = arith.negf %31 : vector<1x16xf32>
      %33 = math.exp %32 : vector<1x16xf32>
      %cst_36 = arith.constant 1.000000e+00 : f32
      %34 = vector.broadcast %cst_36 : f32 to vector<1x16xf32>
      %35 = arith.addf %34, %33 : vector<1x16xf32>
      %36 = arith.divf %34, %35 : vector<1x16xf32>
      %37 = vector.shape_cast %36 : vector<1x16xf32> to vector<1x1x16xf32>
      %c0_37 = arith.constant 0 : index
      %c0_38 = arith.constant 0 : index
      %c0_39 = arith.constant 0 : index
      %38 = vector.load %arg5[%c0_37, %c0_38, %c0_39] : memref<1x1x16xf32, #tpu.memory_space<vmem>>, vector<1x1x16xf32>
      tpu.vector_store %arg5[%c0_37, %c0_38, %c0_39], %37 {strides = array<i32>} : memref<1x1x16xf32, #tpu.memory_space<vmem>>, vector<1x1x16xf32>,
    } else {
    }
    return
  }
  func.func @transform_0(%arg0: i32, %arg1: i32) -> (i32, i32, i32) {
    %c0_i32 = arith.constant 0 : i32
    %c0_i32_0 = arith.constant 0 : i32
    return %arg0, %c0_i32, %arg1 : i32, i32, i32
  }
  func.func @transform_1(%arg0: i32, %arg1: i32) -> (i32, i32) {
    %c0_i32 = arith.constant 0 : i32
    %c0_i32_0 = arith.constant 0 : i32
    %c0_i32_1 = arith.constant 0 : i32
    return %c0_i32, %c0_i32_0 : i32, i32
  }
  func.func @transform_2(%arg0: i32, %arg1: i32) -> (i32, i32) {
    %c0_i32 = arith.constant 0 : i32
    %c0_i32_0 = arith.constant 0 : i32
    %c0_i32_1 = arith.constant 0 : i32
    return %c0_i32, %c0_i32_0 : i32, i32
  }
  func.func @transform_3(%arg0: i32, %arg1: i32) -> (i32, i32, i32) {
    %c0_i32 = arith.constant 0 : i32
    %c0_i32_0 = arith.constant 0 : i32
    %c0_i32_1 = arith.constant 0 : i32
    return %arg0, %c0_i32, %c0_i32_0 : i32, i32, i32
  }
}

</mosaic_0001>

<bundles_post_ra>
// kernel: tpu_custom_call.1
= control target key start
LH: loop header
LB: loop body
LE: loop exit
PB: predicated region body
PF: predicated region fallthrough
CT: control target
= control target key end

     0   :  { %8 = vsyncpa [#allocation5], 0  ;;  %s1052_s0 = inlined_call_operand.hbm [shape: f32[2,16,256], index: 0, kind: input, shape index: {}]   ;;  %s1053_s1 = inlined_call_operand.vmem [shape: f32[16,4], index: 1, kind: input, shape index: {}]   ;;  %s1054_s2 = inlined_call_operand.vmem [shape: f32[4,16], index: 2, kind: input, shape index: {}]   ;;  %s1055_s3 = inlined_call_operand.hbm [shape: f32[2,1,16], index: 3, kind: output, shape index: {}]  }
   0x1   :  { %10 = vsyncpa [#allocation5 + $0x1], 0 }
   0x2   :  { %11 = vsyncpa [#allocation6], 0 }
   0x3   :  { %13 = vsyncpa [#allocation6 + $0x1], 0  ;;  %s866_s12 = smov 0   ;;  %s868_s13 = smov 0  }
   0x4   :  { %s870_s14 = smov 0   ;;  %s872_s15 = smov 0  }
   0x5   :  { %s874_s16 = smov 0   ;;  %s876_s17 = smov 0  }
   0x6 LB: > { %s603_s18 = sadd.s32 4294967295, %s837_s17   ;;  %s604_s19 = sadd.s32 4294967294, %s837_s17   ;;  %s837_s17 = sphi %s876_s17, %s19_s17   ;;  %s833_s16 = sphi %s874_s16, %s1070_s16   ;;  %s829_s15 = sphi %s872_s15, %s1069_s15   ;;  %s825_s14 = sphi %s870_s14, %s1068_s14   ;;  %s821_s13 = sphi %s868_s13, %s1067_s13   ;;  %s817_s12 = sphi %s866_s12, %s1066_s12  }
   0x7   : > { %s31_s20 = sadd.s32 1, %s833_s16  ;;  %s40_s21 = sadd.s32 1, %s825_s14 }
   0x8   : > { %p33_p0 = scmp.ge.s32.totalorder %s31_s20, 2  ;;  %p47_p1 = scmp.ne.s32.totalorder %s825_s14, %s821_s13 }
   0x9   : > { %p48_p2 = scmp.eq.s32.totalorder %s837_s17, 0  ;;  %p53_p3 = scmp.ne.s32.totalorder %s821_s13, %s817_s12 }
   0xa   : > { %s1072_s20 = smov (%p33_p0, %s31_s20), 0  ;;  %p54_p5 = scmp.eq.s32.totalorder %s603_s18, 0 }
   0xb   : > { %p907_p4 = por %p48_p2, %p47_p1  ;;  %s35_s23 = ssub.s32 %s833_s16, %s1072_s20 }
   0xc   : > { %p119_p6 = scmp.eq.s32.totalorder %s603_s18, 1  ;;  %p38_p7 = scmp.eq.s32.totalorder %s35_s23, 0 }
   0xd   : > { %p913_p8 = por %p54_p5, %p53_p3  ;;  %p125_p10 = scmp.eq.s32.totalorder %s604_s19, 1 }
   0xe   : > { %p917_p9 = por %p119_p6, %p47_p1  ;;  %p666_p13 = scmp.lt.s32.totalorder %s837_s17, 2 }
   0xf   : > { %s922_s26 = scalar_select %p38_p7, %s825_s14, %s40_s21  }
  0x10   : > { %s1059_s25 = scalar_select %p917_p9, 1, 0 }
  0x11   : > { %p924_p11 = por %p125_p10, %p53_p3  ;;  %s151_s28 = sand.u32 1, %s825_s14  }
  0x12   : > { %s607_s29 = sshll.u32 %s151_s28, 5  ;;  %s620_s30 = sshll.u32 %s833_s16, 9 }
  0x13   : > { %s1060_s27 = scalar_select %p924_p11, 1, 0 }
  0x14   : > { %s935_s6 = scalar_lea.hbm %s1052_s0, %s620_s30  ;;  %s155_s7 = scalar_lea.vmem [#allocation4], %s607_s29 }
  0x15   : > { %s164_s8 = sshll.u32 %s155_s7, 4  ;;  %p941_p0 = pnand %p666_p13, %p907_p4  ;;  %s937_s8 = int_to_ptr.vmem [resolvable:$true] %s164_s8 }
  0x16   : > { %s946_s10 = scalar_lea.sflag [#allocation5], %s151_s28  ;;  %s725_s11 = scalar_lea.hbm %s935_s6, 512 }
  0x17   : > { %p726_p2 = scmp.ne.s32.totalorder %s935_s6, %s725_s11  ;;  %p727_p3 = pneg %p941_p0 }
  0x18   : > { %s730_s21 = scalar_lea.hbm %s1052_s0, 1024  ;;  %p731_p4 = scmp.lt.u32.totalorder %s935_s6, %s1052_s0 }
  0x19   : > { %p728_p5 = pnand %p727_p3, %p726_p2  ;;  %p732_p7 = scmp.lt.u32.totalorder %s730_s21, %s725_s11 }
  0x1a   : > { %p734_p13 = scmp.lt.u32.totalorder %s725_s11, %s935_s6 }
  0x1b   : > { %p729_p6 = pneg %p728_p5  ;;  %p733_p10 = por %p732_p7, %p731_p4 }
  0x1d   : > { %p735_p12 = por %p734_p13, %p733_p10 }
  0x1f   : > { %p736_p1 = pnand %p735_p12, %p729_p6 }
  0x21   : > { %739 = shalt.err (!%p736_p1)
}
  0x22   : > { %s740_s28 = scalar_lea.vmem %s937_s8, 512  ;;  %s839_s29 = smov [#allocation4]  }
  0x23   : > { %p741_p2 = scmp.ne.s32.totalorder %s937_s8, %s740_s28  ;;  %s745_s30 = sshll.u32 %s839_s29, 4  ;;  %s746_s30 = int_to_ptr.vmem [resolvable:$false] %s745_s30 }
  0x24   : > { %s747_s4 = scalar_lea.vmem %s746_s30, 1024  ;;  %p748_p9 = scmp.lt.s32.totalorder %s937_s8, %s746_s30 }
  0x25   : > { %p743_p5 = pnand %p741_p2, %p727_p3  ;;  %p749_p4 = scmp.lt.s32.totalorder %s747_s4, %s740_s28 }
  0x27   : > { %p744_p11 = pneg %p743_p5  ;;  %p750_p7 = por %p749_p4, %p748_p9 }
  0x29   : > { %p751_p10 = pnand %p750_p7, %p744_p11 }
  0x2b   : > { %754 = shalt.err (!%p751_p10)
}
  0x2c   : > { %s840_s5 = smov 256   ;;  %s841_s7 = smov 16  }
  0x2d   : > { %661 = dma.hbm_to_vmem [thread:$0]  (!%p941_p0), %s935_s6, 512, %s937_s8, %s946_s10, %s840_s5, %s840_s5, %s841_s7  }
  0x2e   : > { %p172_p12 = scmp.lt.s32.totalorder %s837_s17, 3  ;;  %p1062_p1 = scmp.ge.s32.totalorder %s837_s17, 1 }
  0x30   : > { %p173_p3 = pnand %p1062_p1, %p172_p12 }
  0x31   : > { %s978_s11 = sand.u32 (!%p173_p3), 1, %s821_s13  }
  0x32   : > { %176 = sbr.rel (%p173_p3) target bundleno = 680 (0x2a8), region = 32  ;;  %s611_s18 = sshll.u32 (!%p173_p3), %s978_s11, 5 }
  0x33   : > { %s179_s19 = scalar_lea.sflag (!%p173_p3), [#allocation5], %s978_s11  ;;  %s182_s21 = scalar_lea.vmem (!%p173_p3), [#allocation4], %s611_s18 }
  0x39   : > { %808 = dma.done.wait (%p913_p8), %s179_s19, 512  }
  0x3a   : > { %810 = vsyncadd (%p913_p8), %s179_s19, 4294966784  ;;  %v217_v0 = vld [vmem:[%s182_s21] sm:$0xff]  ;;  %v223_v1 = vld [vmem:[%s182_s21 + $0x8] sm:$0xff]  ;;  %v842_v11 = vmov 0.0|0.0   ;;  %vm843_vm0 = vmmov 0   ;;  %v844_v12 = vmov 0.0   ;;  %v255_v13 = vlaneseq }
  0x3b   : > { %v218_v2 = vld [vmem:[%s182_s21 + $0x10] sm:$0xff]  ;;  %v227_v3 = vmax.f32 %v217_v0, %v223_v1  ;;  %v225_v4 = vadd.f32 %v223_v1, %v217_v0  ;;  %v224_v5 = vld [vmem:[%s182_s21 + $0x18] sm:$0xff]  ;;  %v250_v8 = vld [vmem:[%s1053_s1] sm:$0xff]  ;;  %651 = vmatprep.subr.bf16.mxu1 %v842_v11  ;;  %648 = vmatprep.subr.bf16.mxu0 %v842_v11  ;;  %vm266_vm1 = vcmask 130112   ;;  %vm268_vm2 = vcmask 130048   ;;  %s617_s23 = sshll.u32 %s829_s15, 4 }
  0x3c   : > { %v228_v6 = vmax.f32 %v218_v2, %v224_v5  ;;  %v226_v7 = vadd.f32 %v224_v5, %v218_v2  ;;  %v251_v9 = vld [vmem:[%s1053_s1 + $0x8] sm:$0xff]  ;;  %640 = vmatprep.mubr.msk.f32.mxu1 %vm843_vm0, %v844_v12  ;;  %633 = vmatprep.mubr.msk.f32.mxu0 %vm843_vm0, %v844_v12  ;;  %v256_v14 = vand.u32 127, %v255_v13  ;;  %v258_v15 = vshrl.u32 %v255_v13, 7  ;;  %v252_v31 = vld [vmem:[%s1054_s2] sm:$0xf]  ;;  %s203_s28 = scalar_lea.vmem [#allocation7], %s978_s11  ;;  %s1003_s5 = scalar_lea.hbm %s1055_s3, %s617_s23 }
  0x3d   : > { %246 = vmax.xlane.f32.xlu1 %v227_v3  ;;  %238 = vadd.xlane.f32.xlu0 %v225_v4  ;;  %v649_v10 = vpack.c.bf16 %v251_v9, %v250_v8  ;;  %vm431_vm3 = vcmask 1043456   ;;  %vm427_vm4 = vcmask 31744   ;;  %s526_s29 = sshll.u32 %s203_s28, 4  ;;  %vm511_vm5 = vcmask 122880   ;;  %s514_s7 = scalar_lea.sflag [#allocation6], %s978_s11  ;;  %s1005_s29 = int_to_ptr.vmem [resolvable:$true] %s526_s29 }
  0x3e   : > { %v261_v16 = vadd.s32 4294967288, %v256_v14  ;;  %v259_v19 = vsub.s32 %v256_v14, %v258_v15  ;;  %s755_s18 = scalar_lea.vmem %s1005_s29, 16  ;;  %p1063_p9 = scmp.ne.s32.totalorder %s1059_s25, 0 }
  0x3f   : > { %653 = vmatpush3.bf16.msra.mxu1 %v649_v10  ;;  %650 = vmatpush3.bf16.msra.mxu0 %v649_v10  ;;  %p756_p8 = scmp.ne.s32.totalorder %s1005_s29, %s755_s18  ;;  %s845_s15 = smov [#allocation7]  }
  0x40   : > { %643 = vmatprep.subr.mxu0 %v844_v12  ;;  %v264_v20 = vsub.s32 %v261_v16, %v258_v15  ;;  %s759_s19 = sshll.u32 %s845_s15, 4  ;;  %s760_s19 = int_to_ptr.vmem [resolvable:$false] %s759_s19 }
  0x41   : > { %248 = vmax.xlane.f32.xlu1 %v228_v6  ;;  %240 = vadd.xlane.f32.xlu0 %v226_v7  ;;  %p757_p11 = pnand %p756_p8, %p1063_p9  ;;  %s761_s21 = scalar_lea.vmem %s760_s19, 32 }
  0x42   : > { %p762_p6 = scmp.lt.s32.totalorder %s1005_s29, %s760_s19  ;;  %p763_p13 = scmp.lt.s32.totalorder %s761_s21, %s755_s18 }
  0x43   : > { %p758_p0 = pneg %p757_p11 }
  0x44   : > { %p764_p2 = por %p763_p13, %p762_p6 }
  0x46   : > { %p765_p5 = pnand %p764_p2, %p758_p0 }
  0xca   : > { %v247_v17 = vpop.xlane.xlu1 %246  ;;  %v239_v18 = vpop.xlane.xlu0 %238 }
  0xcb   : > { %v242_v21 = vmul.f32 0.00390625, %v239_v18  ;;  %v347_v24 = vrot.slane %v247_v17, %v259_v19 }
  0xcd   : > { %v260_v27 = vrot.slane %v242_v21, %v259_v19 }
  0xce   : > { %v249_v22 = vpop.xlane.xlu1 %248  ;;  %v241_v23 = vpop.xlane.xlu0 %240 }
  0xcf   : > { %v351_v25 = vrot.slane %v249_v22, %v264_v20  ;;  %v243_v26 = vmul.f32 0.00390625, %v241_v23 }
  0xd1   : > { %v265_v28 = vrot.slane %v243_v26, %v264_v20  ;;  %v352_v29 = vsel %vm266_vm1, %v351_v25, %v347_v24 }
  0xd2   : > { %641 = vmatmul.mubr.msk.f32.vlgmr.msra.gmra.mrb[0].mxu1 %vm268_vm2, %v352_v29 }
  0xd3   : > { %v267_v30 = vsel %vm266_vm1, %v265_v28, %v260_v27 }
  0xd4   : > { %634 = vmatmul.mubr.msk.f32.vlgmr.msra.gmra.mrb[0].mxu0 %vm268_vm2, %v267_v30 }
  0xd5   : > { %645 = vmatprep.mubr.msk.f32.mxu0 %vm843_vm0, %v844_v12  ;;  %644 = vmatpush3.msk.msra.mxu0 %vm431_vm3, %v252_v31 }
 0x1a5   : > { %v421_v32 = vpop.f32.mrb[0].mxu1 }
 0x1a6   : > { %v642_v33 = vpop.f32.mrb[1].mxu1  ;;  %v425_v35 = vmax.f32 %v421_v32, 0.0 }
 0x1a7   : > { %v337_v34 = vpop.f32.mrb[0].mxu0 }
 0x1a8   : > { %v341_v36 = vmax.f32 %v337_v34, 0.0  ;;  %v635_v37 = vpop.f32.mrb[1].mxu0 }
 0x1aa   : > { %v426_v38 = vadd.f32 %v425_v35, %v341_v36 }
 0x1ac   : > { %646 = vmatmul.mubr.msk.f32.vlgmr.msra.gmra.mrb[2].mxu0 %vm427_vm4, %v426_v38 }
 0x27f   : > { %v501_v39 = vpop.f32.mrb[2].mxu0 }
 0x280   : > { %v616_v40 = vmul.f32 -1.442695, %v501_v39  ;;  %v647_v41 = vpop.f32.mrb[3].mxu0 }
 0x282   : > { %721 = vpow2.f32 %v616_v40 }
 0x28c   : > { %v722_v42 = vpop.eup %721 }
 0x28d   : > { %v508_v43 = vadd.f32 1.0, %v722_v42 }
 0x28f   : > { %723 = vrcp.f32 %v508_v43 }
 0x299   : > { %v724_v44 = vpop.eup %723 }
 0x29a   : > { %512 = vst.msk [vmem:[%s203_s28] sm:$0x1] %vm511_vm5, %v724_v44 }
 0x29b   : > { %768 = shalt.err (!%p765_p5)
}
 0x29c   : > { %s769_s11 = scalar_lea.hbm %s1003_s5, 16  ;;  %s773_s9 = scalar_lea.hbm %s1055_s3, 32 }
 0x29d   : > { %p770_p4 = scmp.ne.s32.totalorder %s1003_s5, %s769_s11  ;;  %p774_p12 = scmp.lt.u32.totalorder %s1003_s5, %s1055_s3 }
 0x29e   : > { %p775_p1 = scmp.lt.u32.totalorder %s773_s9, %s769_s11  ;;  %p777_p8 = scmp.lt.u32.totalorder %s769_s11, %s1003_s5 }
 0x29f   : > { %p771_p7 = pnand %p770_p4, %p1063_p9 }
 0x2a0   : > { %p776_p3 = por %p775_p1, %p774_p12 }
 0x2a1   : > { %p772_p10 = pneg %p771_p7 }
 0x2a2   : > { %p778_p11 = por %p777_p8, %p776_p3 }
 0x2a4   : > { %p779_p0 = pnand %p778_p11, %p772_p10 }
 0x2a6   : > { %782 = shalt.err (!%p779_p0)
}
 0x2a7   : > { %656 = dma.vmem_to_hbm [thread:$0]  (%p1063_p9), %s1005_s29, 16, %s1003_s5, %s514_s7  }
 0x2a8 PF: > { %s538_s22 = sand.u32 1, %s817_s12   ;;  %p1064_p6 = scmp.ne.s32.totalorder %s1060_s27, 0 }
 0x2a9   : > { %p1065_p13 = scmp.ge.s32.totalorder %s837_s17, 2  ;;  %s539_s23 = scalar_lea.sflag [#allocation6], %s538_s22 }
 0x2ab   : > { %p663_p2 = pnand %p1065_p13, %p1064_p6 }
 0x2ad   : > { %812 = dma.done.wait (!%p663_p2), %s539_s23, 16  }
 0x2ae   : > { %814 = vsyncadd (!%p663_p2), %s539_s23, 4294967280  ;;  %s19_s17 = sadd.s32 1, %s837_s17   ;;  %s1066_s12 = smov %s821_s13 }
 0x2af   : > { %p16_p5 = scmp.ge.s32.totalorder %s19_s17, 4   ;;  %s1067_s13 = smov %s825_s14 }
 0x2b0   : > { %s1068_s14 = smov %s922_s26  ;;  %s1069_s15 = smov %s833_s16 }
 0x2b1   : > { %s1070_s16 = smov %s1072_s20  ;;  %18 = sbr.rel (!%p16_p5) target bundleno = 6 (0x6), region = 85 }
 0x2b8   :  { %543 = vsyncpa [#allocation5], 1 }
 0x2b9   :  { %545 = vsyncpa [#allocation5 + $0x1], 1 }
 0x2ba   :  { %546 = vsyncpa [#allocation6], 1 }
 0x2bb   :  { %548 = vsyncpa [#allocation6 + $0x1], 1 }

</bundles_post_ra>
